<compile_context>
chip_gen: v7x
topology: tpu7x:2x2x1
jax: 0.10.0
libtpu: 0.0.40
codegen_flags: <defaults>
</compile_context>

<pallas_src>
import functools

import jax
import jax.numpy as jnp
from jax.experimental import pallas as pl
from jax.experimental.pallas import tpu as pltpu


D_IN = 1024      # size_dict['small'][0]
D_HID = 512      # size_dict['small'][1]
_NEG = -1e30     # bias for padded class lanes -> exp() underflows to exactly 0


def _round_up(x, m):
    return ((x + m - 1) // m) * m


def _pick_tiles(n, block_n):
    """Pick (rows per block, padded rows, grid steps).

    Blocks are 16-row aligned (bf16 min tile).  Prefer an even number of grid
    steps (v7x has 2 TensorCores; the grid axis is 'parallel') and split the
    bag evenly so row padding stays minimal instead of padding to block_n.
    """
    n16 = _round_up(max(n, 1), 16)
    steps = max(1, pl.cdiv(n16, block_n))
    if steps % 2 == 1 and n16 > 16:
        steps += 1                       # even split across the 2 v7x TCs
    bn = _round_up(pl.cdiv(n16, steps), 16)
    return bn, bn * steps, steps


def _mil_kernel(x_ref, w1_ref, b1_ref, w2_ref, b2_ref, probs_ref):
    # fc: Linear(1024, 512) + ReLU   (bf16 operands, f32 MXU accumulation)
    h = jnp.dot(x_ref[...], w1_ref[...], preferred_element_type=jnp.float32)
    h = jnp.maximum(h + b1_ref[...], 0.0)

    # n_classes Linear(512, 1) heads fused into one (512, C_pad) matmul.
    # Padded class lanes: w=0, b=-1e30 -> logits=-1e30 -> softmax weight 0.
    logits = jnp.dot(h.astype(jnp.bfloat16), w2_ref[...],
                     preferred_element_type=jnp.float32) + b2_ref[...]

    # Softmax over the lane-dense (padded) class dim, per instance.
    # Exact f32 normalization so each row sums to 1 (the approximate
    # reciprocal was ~1e-3 off and failed the sum-to-1 check).
    m = jnp.max(logits, axis=-1, keepdims=True)
    e = jnp.exp(logits - m)
    s = jnp.sum(e, axis=-1, keepdims=True)
    probs_ref[...] = e * (1.0 / s)


def mil_fc_mc_pallas(h, w1, b1, w2, b2, *, block_n=1024):
    """Fused fc + classifier heads + softmax.

    Returns padded probabilities of shape (n_pad, c_pad) float32.  Rows >= N
    and class lanes >= n_classes are padding; padded class lanes are exactly 0.
    """
    n, d_in = h.shape
    assert d_in == D_IN
    n_classes = w2.shape[1]

    # --- lane-dense class dim (pad to a multiple of 128) ---
    c_pad = max(128, _round_up(n_classes, 128))
    w2p = jnp.zeros((D_HID, c_pad), jnp.float32).at[:, :n_classes].set(w2)
    b2p = jnp.full((1, c_pad), _NEG, jnp.float32).at[:, :n_classes].set(
        b2.reshape(1, n_classes))

    # --- bf16 matmul operands (f32 accumulation happens in-kernel) ---
    w1b = w1.astype(jnp.bfloat16)
    w2b = w2p.astype(jnp.bfloat16)
    b1r = b1.reshape(1, D_HID).astype(jnp.float32)

    # --- bf16 input, padded to a 16-row-aligned tile multiple ---
    bn, n_pad, steps = _pick_tiles(n, block_n)
    hb = h.astype(jnp.bfloat16)
    hp = hb if n_pad == n else (
        jnp.zeros((n_pad, D_IN), jnp.bfloat16).at[:n].set(hb))

    in_specs = [
        pl.BlockSpec((bn, D_IN), lambda i: (i, 0)),       # x tiles
        pl.BlockSpec((D_IN, D_HID), lambda i: (0, 0)),    # w1 (resident)
        pl.BlockSpec((1, D_HID), lambda i: (0, 0)),       # b1
        pl.BlockSpec((D_HID, c_pad), lambda i: (0, 0)),   # w2 (resident)
        pl.BlockSpec((1, c_pad), lambda i: (0, 0)),       # b2
    ]
    out_spec = pl.BlockSpec((bn, c_pad), lambda i: (i, 0))

    flops = 2 * n_pad * (D_IN * D_HID + D_HID * c_pad)
    bytes_accessed = (
        n_pad * D_IN * 2                         # bf16 x tiles (dominant stream)
        + D_IN * D_HID * 2 + D_HID * c_pad * 2   # bf16 weights (resident)
        + (D_HID + c_pad) * 4                    # biases
        + n_pad * c_pad * 4)                     # probs writeback
    cost = pl.CostEstimate(flops=flops, transcendentals=n_pad * c_pad,
                           bytes_accessed=bytes_accessed)

    probs_pad = pl.pallas_call(
        _mil_kernel,
        out_shape=jax.ShapeDtypeStruct((n_pad, c_pad), jnp.float32),
        grid=(steps,),
        in_specs=in_specs,
        out_specs=out_spec,
        compiler_params=pltpu.CompilerParams(
            dimension_semantics=("parallel",),     # shards steps across v7x TCs
            vmem_limit_bytes=48 * 1024 * 1024,     # ~10 MiB used at bn=1024
        ),
        cost_estimate=cost,
    )(hp, w1b, b1r, w2b, b2p)
    return probs_pad


def mil_fc_mc_forward(h, params, n_classes, return_features=False):
    """Mirrors MIL_fc_mc.forward (top_k == 1):
    returns (top_instance, Y_prob, Y_hat, y_probs, results_dict)."""
    n = h.shape[0]
    probs_pad = mil_fc_mc_pallas(h, params["w1"], params["b1"],
                                 params["w2"], params["b2"])
    c_pad = probs_pad.shape[1]

    # top_k == 1 selection directly on the padded class lanes: padded lanes
    # are exactly 0 so they can never beat the per-row max (>= 1/n_classes);
    # padded rows are excluded by the cheap leading-dim [:n] slice.
    flat_idx = jnp.argmax(probs_pad[:n].reshape(-1))
    row = flat_idx // c_pad
    col = flat_idx % c_pad

    # Recompute the selected row's features / logits (1x1024 matvec) instead
    # of writing full (N, 512) features + (N, 128) logits back to HBM.
    x_row = jax.lax.dynamic_slice_in_dim(h, row, 1, axis=0).astype(jnp.bfloat16)
    feat_row = jnp.maximum(
        jnp.dot(x_row, params["w1"].astype(jnp.bfloat16),
                preferred_element_type=jnp.float32)
        + params["b1"].reshape(1, D_HID), 0.0)
    top_instance = (jnp.dot(feat_row.astype(jnp.bfloat16),
                            params["w2"].astype(jnp.bfloat16),
                            preferred_element_type=jnp.float32)
                    + params["b2"].reshape(1, n_classes))

    Y_prob = jax.lax.dynamic_slice_in_dim(probs_pad, row, 1, axis=0)[:, :n_classes]
    Y_hat = col.reshape(1)
    y_probs = probs_pad[:n, :n_classes]      # user-facing (N, n_classes)

    results_dict = {}
    if return_features:
        results_dict["features"] = feat_row  # (1, 512)
    return top_instance, Y_prob, Y_hat, y_probs, results_dict


def init_params(key, n_classes):
    """Synthetic init matching initialize_weights(): xavier_normal_ weights,
    zero biases."""
    k1, k2 = jax.random.split(key)
    std1 = (2.0 / (D_IN + D_HID)) ** 0.5
    w1 = std1 * jax.random.normal(k1, (D_IN, D_HID), dtype=jnp.float32)
    b1 = jnp.zeros((1, D_HID), dtype=jnp.float32)
    std2 = (2.0 / (D_HID + 1)) ** 0.5
    w2 = std2 * jax.random.normal(k2, (D_HID, n_classes), dtype=jnp.float32)
    b2 = jnp.zeros((1, n_classes), dtype=jnp.float32)
    return {"w1": w1, "b1": b1, "w2": w2, "b2": b2}


def _reference_forward(h, params, *, emulate_bf16):
    """Pure-JAX reference (optionally emulating the kernel's bf16 operands)."""
    w1, w2 = params["w1"], params["w2"]
    if emulate_bf16:
        hid = jnp.dot(h.astype(jnp.bfloat16), w1.astype(jnp.bfloat16),
                      preferred_element_type=jnp.float32)
        hid = jnp.maximum(hid + params["b1"], 0.0)
        logits = jnp.dot(hid.astype(jnp.bfloat16), w2.astype(jnp.bfloat16),
                         preferred_element_type=jnp.float32) + params["b2"]
    else:
        hid = jnp.maximum(h @ w1 + params["b1"], 0.0)
        logits = hid @ w2 + params["b2"]
    probs = jax.nn.softmax(logits, axis=1)
    return logits, probs


if __name__ == "__main__":
    n_classes = 3   # MIL_fc_mc asserts n_classes > 2
    key = jax.random.PRNGKey(0)
    k_p, k_a, k_b = jax.random.split(key, 3)
    params = init_params(k_p, n_classes)

    fwd = jax.jit(functools.partial(
        mil_fc_mc_forward, n_classes=n_classes, return_features=True))

    # n=8   -> tiny-bag path: one 16-row tile.
    # n=300 -> 2-step "parallel" grid (160-row blocks), row padding 300 -> 320.
    for n_instances, k in ((8, k_a), (300, k_b)):
        h = jax.random.normal(k, (n_instances, D_IN), dtype=jnp.float32)
        top_instance, Y_prob, Y_hat, y_probs, results = fwd(h, params)
        jax.block_until_ready((top_instance, Y_prob, Y_hat, y_probs,
                               results["features"]))

        # sanity checks
        ref_logits_bf, ref_probs_bf = _reference_forward(
            h, params, emulate_bf16=True)
        ref_logits_f32, ref_probs_f32 = _reference_forward(
            h, params, emulate_bf16=False)

        assert y_probs.shape == (n_instances, n_classes)
        assert top_instance.shape == (1, n_classes)
        assert Y_prob.shape == (1, n_classes)
        assert Y_hat.shape == (1,)
        assert results["features"].shape == (1, D_HID)
        assert jnp.allclose(y_probs, ref_probs_bf, atol=1e-2, rtol=1e-2)
        assert jnp.allclose(y_probs, ref_probs_f32, atol=1e-1, rtol=1e-1)
        assert jnp.allclose(jnp.sum(y_probs, axis=1), 1.0, atol=1e-3)
        assert 0 <= int(Y_hat[0]) < n_classes
        # recomputed top-row logits must be consistent with the kernel's probs
        assert jnp.allclose(jax.nn.softmax(top_instance, axis=1), Y_prob,
                            atol=2e-2, rtol=2e-2)

    print("KERNEL_OK")
</pallas_src>

<mosaic_0001>
module attributes {stable_mosaic.version = 11 : i64} {
  func.func @_mil_kernel(%arg0: i32, %arg1: memref<16x1024xbf16, #tpu.memory_space<vmem>>, %arg2: memref<1024x512xbf16, #tpu.memory_space<vmem>>, %arg3: memref<1x512xf32, #tpu.memory_space<vmem>>, %arg4: memref<512x128xbf16, #tpu.memory_space<vmem>>, %arg5: memref<1x128xf32, #tpu.memory_space<vmem>>, %arg6: memref<16x128xf32, #tpu.memory_space<vmem>>) attributes {dimension_semantics = [#tpu.dimension_semantics<parallel>], iteration_bounds = array<i64: 1>, scalar_prefetch = 0 : i64, scratch_operands = 0 : i64, tpu.core_type = #tpu.core_type<tc>, window_params = [{transform_indices = @transform_0, window_bounds = array<i64: 16, 1024>}, {pipeline_mode = #tpu.pipeline_mode<synchronous>, transform_indices = @transform_1, window_bounds = array<i64: 1024, 512>}, {pipeline_mode = #tpu.pipeline_mode<synchronous>, transform_indices = @transform_2, window_bounds = array<i64: 1, 512>}, {pipeline_mode = #tpu.pipeline_mode<synchronous>, transform_indices = @transform_3, window_bounds = array<i64: 512, 128>}, {pipeline_mode = #tpu.pipeline_mode<synchronous>, transform_indices = @transform_4, window_bounds = array<i64: 1, 128>}, {transform_indices = @transform_5, window_bounds = array<i64: 16, 128>}]} {
    %c0 = arith.constant 0 : index
    %c0_0 = arith.constant 0 : index
    %0 = vector.load %arg1[%c0, %c0_0] : memref<16x1024xbf16, #tpu.memory_space<vmem>>, vector<16x1024xbf16>
    %c0_1 = arith.constant 0 : index
    %c0_2 = arith.constant 0 : index
    %1 = vector.load %arg2[%c0_1, %c0_2] : memref<1024x512xbf16, #tpu.memory_space<vmem>>, vector<1024x512xbf16>
    %cst = arith.constant dense<0.000000e+00> : vector<16x512xf32>
    %2 = tpu.matmul %0, %1, %cst {dimension_numbers = #tpu.dot_dimension_numbers<[1], [0], [0], [1], [0, 0, 1, 1], [], []>} : vector<16x1024xbf16>, vector<1024x512xbf16>, vector<16x512xf32> -> vector<16x512xf32>
    %c0_3 = arith.constant 0 : index
    %c0_4 = arith.constant 0 : index
    %3 = vector.load %arg3[%c0_3, %c0_4] : memref<1x512xf32, #tpu.memory_space<vmem>>, vector<1x512xf32>
    %4 = vector.broadcast %3 : vector<1x512xf32> to vector<16x512xf32>
    %5 = arith.addf %2, %4 : vector<16x512xf32>
    %cst_5 = arith.constant 0.000000e+00 : f32
    %6 = vector.broadcast %cst_5 : f32 to vector<16x512xf32>
    %7 = arith.maximumf %5, %6 : vector<16x512xf32>
    %8 = arith.truncf %7 : vector<16x512xf32> to vector<16x512xbf16>
    %c0_6 = arith.constant 0 : index
    %c0_7 = arith.constant 0 : index
    %9 = vector.load %arg4[%c0_6, %c0_7] : memref<512x128xbf16, #tpu.memory_space<vmem>>, vector<512x128xbf16>
    %cst_8 = arith.constant dense<0.000000e+00> : vector<16x128xf32>
    %10 = tpu.matmul %8, %9, %cst_8 {dimension_numbers = #tpu.dot_dimension_numbers<[1], [0], [0], [1], [0, 0, 1, 1], [], []>} : vector<16x512xbf16>, vector<512x128xbf16>, vector<16x128xf32> -> vector<16x128xf32>
    %c0_9 = arith.constant 0 : index
    %c0_10 = arith.constant 0 : index
    %11 = vector.load %arg5[%c0_9, %c0_10] : memref<1x128xf32, #tpu.memory_space<vmem>>, vector<1x128xf32>
    %12 = vector.broadcast %11 : vector<1x128xf32> to vector<16x128xf32>
    %13 = arith.addf %10, %12 : vector<16x128xf32>
    %cst_11 = arith.constant dense<0xFF800000> : vector<16xf32>
    %14 = vector.multi_reduction <maximumf>, %13, %cst_11 [1] : vector<16x128xf32> to vector<16xf32>
    %15 = vector.shape_cast %14 : vector<16xf32> to vector<16x1xf32>
    %16 = vector.broadcast %15 : vector<16x1xf32> to vector<16x128xf32>
    %17 = arith.subf %13, %16 : vector<16x128xf32>
    %18 = math.exp %17 : vector<16x128xf32>
    %cst_12 = arith.constant dense<0.000000e+00> : vector<16xf32>
    %19 = vector.multi_reduction <add>, %18, %cst_12 [1] : vector<16x128xf32> to vector<16xf32>
    %20 = vector.shape_cast %19 : vector<16xf32> to vector<16x1xf32>
    %cst_13 = arith.constant 1.000000e+00 : f32
    %21 = vector.broadcast %cst_13 : f32 to vector<16x1xf32>
    %22 = arith.divf %21, %20 : vector<16x1xf32>
    %23 = vector.broadcast %22 : vector<16x1xf32> to vector<16x128xf32>
    %24 = arith.mulf %18, %23 : vector<16x128xf32>
    %c0_14 = arith.constant 0 : index
    %c0_15 = arith.constant 0 : index
    %25 = vector.load %arg6[%c0_14, %c0_15] : memref<16x128xf32, #tpu.memory_space<vmem>>, vector<16x128xf32>
    tpu.vector_store %arg6[%c0_14, %c0_15], %24 {strides = array<i32>} : memref<16x128xf32, #tpu.memory_space<vmem>>, vector<16x128xf32>,
    return
  }
  func.func @transform_0(%arg0: i32) -> (i32, i32) {
    %c0_i32 = arith.constant 0 : i32
    %c0_i32_0 = arith.constant 0 : i32
    return %arg0, %c0_i32 : i32, i32
  }
  func.func @transform_1(%arg0: i32) -> (i32, i32) {
    %c0_i32 = arith.constant 0 : i32
    %c0_i32_0 = arith.constant 0 : i32
    %c0_i32_1 = arith.constant 0 : i32
    return %c0_i32, %c0_i32_0 : i32, i32
  }
  func.func @transform_2(%arg0: i32) -> (i32, i32) {
    %c0_i32 = arith.constant 0 : i32
    %c0_i32_0 = arith.constant 0 : i32
    %c0_i32_1 = arith.constant 0 : i32
    return %c0_i32, %c0_i32_0 : i32, i32
  }
  func.func @transform_3(%arg0: i32) -> (i32, i32) {
    %c0_i32 = arith.constant 0 : i32
    %c0_i32_0 = arith.constant 0 : i32
    %c0_i32_1 = arith.constant 0 : i32
    return %c0_i32, %c0_i32_0 : i32, i32
  }
  func.func @transform_4(%arg0: i32) -> (i32, i32) {
    %c0_i32 = arith.constant 0 : i32
    %c0_i32_0 = arith.constant 0 : i32
    %c0_i32_1 = arith.constant 0 : i32
    return %c0_i32, %c0_i32_0 : i32, i32
  }
  func.func @transform_5(%arg0: i32) -> (i32, i32) {
    %c0_i32 = arith.constant 0 : i32
    %c0_i32_0 = arith.constant 0 : i32
    return %arg0, %c0_i32 : i32, i32
  }
}

</mosaic_0001>

<bundles_post_ra>
// kernel: mil_fc_mc_forward.1
= control target key start
LH: loop header
LB: loop body
LE: loop exit
PB: predicated region body
PF: predicated region fallthrough
CT: control target
= control target key end

     0   :  { %s4105_s1 = inlined_call_operand.vmem [shape: bf16[1024,512], index: 1, kind: input, shape index: {}]   ;;  %s4106_s0 = inlined_call_operand.vmem [shape: bf16[16,1024], index: 0, kind: input, shape index: {}]   ;;  %s4107_s3 = inlined_call_operand.vmem [shape: bf16[512,128], index: 3, kind: input, shape index: {}]   ;;  %s4108_s2 = inlined_call_operand.vmem [shape: f32[1,512], index: 2, kind: input, shape index: {}]   ;;  %s4109_s4 = inlined_call_operand.vmem [shape: f32[1,128], index: 4, kind: input, shape index: {}]   ;;  %s4110_s5 = inlined_call_operand.vmem [shape: f32[16,128], index: 5, kind: output, shape index: {}]  }
   0x1   :  { %v2727_v0 = vld [vmem:[%s4105_s1 + $0x4] ss:$16 sps:$4 sm:$0xff]   ;;  %v2729_v1 = vld [vmem:[%s4105_s1 + $0xc] ss:$16 sps:$4 sm:$0xff]   ;;  %v2731_v2 = vld [vmem:[%s4105_s1] ss:$16 sps:$4 sm:$0xff]  }
   0x2   :  { %1627 = vmatprep.subr.bf16.mxu0 %v2727_v0  ;;  %v2732_v3 = vld [vmem:[%s4105_s1 + $0x8] ss:$16 sps:$4 sm:$0xff]   ;;  %1799 = vmatprep.subr.bf16.mxu1 %v2729_v1  ;;  %v2733_v4 = vld [vmem:[%s4105_s1 + $0x24] ss:$16 sps:$4 sm:$0xff]   ;;  %v2735_v5 = vld [vmem:[%s4105_s1 + $0x2c] ss:$16 sps:$4 sm:$0xff]  }
   0x3   :  { %1628 = vmatpush1.bf16.msra.mxu0 %v2731_v2  ;;  %1800 = vmatpush1.bf16.msra.mxu1 %v2732_v3  ;;  %v2737_v6 = vld [vmem:[%s4105_s1 + $0x20] ss:$16 sps:$4 sm:$0xff]   ;;  %v2738_v7 = vld [vmem:[%s4105_s1 + $0x28] ss:$16 sps:$4 sm:$0xff]   ;;  %v2739_v8 = vld [vmem:[%s4105_s1 + $0x44] ss:$16 sps:$4 sm:$0xff]  }
   0x4   :  { %1629 = vmatprep.subr.bf16.mxu0 %v2733_v4  ;;  %1801 = vmatprep.subr.bf16.mxu1 %v2735_v5  ;;  %v2741_v9 = vld [vmem:[%s4105_s1 + $0x4c] ss:$16 sps:$4 sm:$0xff]   ;;  %v2743_v10 = vld [vmem:[%s4105_s1 + $0x40] ss:$16 sps:$4 sm:$0xff]   ;;  %v2744_v11 = vld [vmem:[%s4105_s1 + $0x48] ss:$16 sps:$4 sm:$0xff]  }
   0x5   :  { %v2745_v12 = vld [vmem:[%s4105_s1 + $0x64] ss:$16 sps:$4 sm:$0xff]   ;;  %v2747_v13 = vld [vmem:[%s4105_s1 + $0x6c] ss:$16 sps:$4 sm:$0xff]   ;;  %v2749_v14 = vld [vmem:[%s4105_s1 + $0x60] ss:$16 sps:$4 sm:$0xff]  }
   0x6   :  { %v2750_v15 = vld [vmem:[%s4105_s1 + $0x68] ss:$16 sps:$4 sm:$0xff]   ;;  %v2751_v16 = vld [vmem:[%s4105_s1 + $0x84] ss:$16 sps:$4 sm:$0xff]   ;;  %v2753_v17 = vld [vmem:[%s4105_s1 + $0x8c] ss:$16 sps:$4 sm:$0xff]  }
   0x7   :  { %1630 = vmatpush1.bf16.msra.mxu0 %v2737_v6  ;;  %1802 = vmatpush1.bf16.msra.mxu1 %v2738_v7  ;;  %v2755_v18 = vld [vmem:[%s4105_s1 + $0x80] ss:$16 sps:$4 sm:$0xff]   ;;  %v2756_v19 = vld [vmem:[%s4105_s1 + $0x88] ss:$16 sps:$4 sm:$0xff]   ;;  %v2757_v20 = vld [vmem:[%s4105_s1 + $0xa4] ss:$16 sps:$4 sm:$0xff]  }
   0x8   :  { %1631 = vmatprep.subr.bf16.mxu0 %v2739_v8  ;;  %1803 = vmatprep.subr.bf16.mxu1 %v2741_v9  ;;  %v2759_v21 = vld [vmem:[%s4105_s1 + $0xac] ss:$16 sps:$4 sm:$0xff]   ;;  %v2761_v22 = vld [vmem:[%s4105_s1 + $0xa0] ss:$16 sps:$4 sm:$0xff]   ;;  %v2762_v23 = vld [vmem:[%s4105_s1 + $0xa8] ss:$16 sps:$4 sm:$0xff]  }
   0x9   :  { %v2763_v24 = vld [vmem:[%s4105_s1 + $0xc4] ss:$16 sps:$4 sm:$0xff]   ;;  %v2765_v25 = vld [vmem:[%s4105_s1 + $0xcc] ss:$16 sps:$4 sm:$0xff]   ;;  %v2767_v26 = vld [vmem:[%s4105_s1 + $0xc0] ss:$16 sps:$4 sm:$0xff]  }
   0xa   :  { %v2768_v27 = vld [vmem:[%s4105_s1 + $0xc8] ss:$16 sps:$4 sm:$0xff]   ;;  %v2769_v28 = vld [vmem:[%s4105_s1 + $0xe4] ss:$16 sps:$4 sm:$0xff]   ;;  %v2771_v29 = vld [vmem:[%s4105_s1 + $0xec] ss:$16 sps:$4 sm:$0xff]  }
   0xb   :  { %1632 = vmatpush1.bf16.msra.mxu0 %v2743_v10  ;;  %1804 = vmatpush1.bf16.msra.mxu1 %v2744_v11  ;;  %v2773_v30 = vld [vmem:[%s4105_s1 + $0xe0] ss:$16 sps:$4 sm:$0xff]   ;;  %v2774_v31 = vld [vmem:[%s4105_s1 + $0xe8] ss:$16 sps:$4 sm:$0xff]   ;;  %v2775_v32 = vld [vmem:[%s4105_s1 + $0x104] ss:$16 sps:$4 sm:$0xff]  }
   0xc   :  { %1633 = vmatprep.subr.bf16.mxu0 %v2745_v12  ;;  %1805 = vmatprep.subr.bf16.mxu1 %v2747_v13  ;;  %v2777_v33 = vld [vmem:[%s4105_s1 + $0x10c] ss:$16 sps:$4 sm:$0xff]   ;;  %v2779_v34 = vld [vmem:[%s4105_s1 + $0x100] ss:$16 sps:$4 sm:$0xff]   ;;  %v2780_v35 = vld [vmem:[%s4105_s1 + $0x108] ss:$16 sps:$4 sm:$0xff]  }
   0xd   :  { %v2781_v36 = vld [vmem:[%s4105_s1 + $0x124] ss:$16 sps:$4 sm:$0xff]   ;;  %v2783_v37 = vld [vmem:[%s4105_s1 + $0x12c] ss:$16 sps:$4 sm:$0xff]   ;;  %v2785_v38 = vld [vmem:[%s4105_s1 + $0x120] ss:$16 sps:$4 sm:$0xff]  }
   0xe   :  { %v2786_v39 = vld [vmem:[%s4105_s1 + $0x128] ss:$16 sps:$4 sm:$0xff]   ;;  %v2787_v40 = vld [vmem:[%s4105_s1 + $0x144] ss:$16 sps:$4 sm:$0xff]   ;;  %v2789_v41 = vld [vmem:[%s4105_s1 + $0x14c] ss:$16 sps:$4 sm:$0xff]  }
   0xf   :  { %1634 = vmatpush1.bf16.msra.mxu0 %v2749_v14  ;;  %1806 = vmatpush1.bf16.msra.mxu1 %v2750_v15  ;;  %v2791_v42 = vld [vmem:[%s4105_s1 + $0x140] ss:$16 sps:$4 sm:$0xff]   ;;  %v2792_v43 = vld [vmem:[%s4105_s1 + $0x148] ss:$16 sps:$4 sm:$0xff]   ;;  %v2793_v44 = vld [vmem:[%s4105_s1 + $0x164] ss:$16 sps:$4 sm:$0xff]  }
  0x10   :  { %1635 = vmatprep.subr.bf16.mxu0 %v2751_v16  ;;  %1807 = vmatprep.subr.bf16.mxu1 %v2753_v17  ;;  %v2795_v45 = vld [vmem:[%s4105_s1 + $0x16c] ss:$16 sps:$4 sm:$0xff]   ;;  %v21_v46 = vld [vmem:[%s4106_s0] sm:$0xff]  ;;  %v2798_v49 = vld [vmem:[%s4105_s1 + $0x168] ss:$16 sps:$4 sm:$0xff]  }
  0x11   :  { %v25_v47 = vld [vmem:[%s4106_s0 + $0x20] sm:$0xff]  ;;  %v2801_v52 = vld [vmem:[%s4105_s1 + $0x18c] ss:$16 sps:$4 sm:$0xff]   ;;  %v2804_v54 = vld [vmem:[%s4105_s1 + $0x188] ss:$16 sps:$4 sm:$0xff]  }
  0x12   :  { %v2797_v48 = vld [vmem:[%s4105_s1 + $0x160] ss:$16 sps:$4 sm:$0xff]   ;;  %v2355_v50 = vcombine.high %v21_v46, %v25_v47  ;;  %v2799_v51 = vld [vmem:[%s4105_s1 + $0x184] ss:$16 sps:$4 sm:$0xff]   ;;  %v2807_v56 = vld [vmem:[%s4105_s1 + $0x1ac] ss:$16 sps:$4 sm:$0xff]   ;;  %v2354_v5 = vcombine.low %v21_v46, %v25_v47 }
  0x13   :  { %1636 = vmatpush1.bf16.msra.mxu0 %v2755_v18  ;;  %1808 = vmatpush1.bf16.msra.mxu1 %v2756_v19  ;;  %v2803_v53 = vld [vmem:[%s4105_s1 + $0x180] ss:$16 sps:$4 sm:$0xff]   ;;  %v2805_v55 = vld [vmem:[%s4105_s1 + $0x1a4] ss:$16 sps:$4 sm:$0xff]   ;;  %v2810_v58 = vld [vmem:[%s4105_s1 + $0x1a8] ss:$16 sps:$4 sm:$0xff]  }
  0x14   :  { %1637 = vmatprep.subr.bf16.mxu0 %v2757_v20  ;;  %1809 = vmatprep.subr.bf16.mxu1 %v2759_v21  ;;  %v2809_v57 = vld [vmem:[%s4105_s1 + $0x1a0] ss:$16 sps:$4 sm:$0xff]   ;;  %v2811_v59 = vld [vmem:[%s4105_s1 + $0x1c4] ss:$16 sps:$4 sm:$0xff]   ;;  %v2813_v60 = vld [vmem:[%s4105_s1 + $0x1cc] ss:$16 sps:$4 sm:$0xff]  }
  0x15   :  { %1659 = vmatprep.mubr.bf16.mxu0 %v2355_v50  ;;  %1831 = vmatprep.mubr.bf16.mxu1 %v2355_v50  ;;  %v2815_v61 = vld [vmem:[%s4105_s1 + $0x1c0] ss:$16 sps:$4 sm:$0xff]   ;;  %v2816_v62 = vld [vmem:[%s4105_s1 + $0x1c8] ss:$16 sps:$4 sm:$0xff]   ;;  %v2817_v63 = vld [vmem:[%s4105_s1 + $0x1e4] ss:$16 sps:$4 sm:$0xff]  }
  0x16   :  { %v2819_v0 = vld [vmem:[%s4105_s1 + $0x1ec] ss:$16 sps:$4 sm:$0xff]   ;;  %v2821_v1 = vld [vmem:[%s4105_s1 + $0x1e0] ss:$16 sps:$4 sm:$0xff]   ;;  %v2822_v2 = vld [vmem:[%s4105_s1 + $0x1e8] ss:$16 sps:$4 sm:$0xff]  }
  0x17   :  { %1638 = vmatpush1.bf16.msra.mxu0 %v2761_v22  ;;  %1810 = vmatpush1.bf16.msra.mxu1 %v2762_v23  ;;  %v2825_v3 = vld [vmem:[%s4105_s1 + $0x204] ss:$16 sps:$4 sm:$0xff]   ;;  %v2828_v4 = vld [vmem:[%s4105_s1 + $0x20c] ss:$16 sps:$4 sm:$0xff]   ;;  %v2823_v6 = vld [vmem:[%s4105_s1 + $0x200] ss:$16 sps:$4 sm:$0xff]  }
  0x18   :  { %1639 = vmatprep.subr.bf16.mxu0 %v2763_v24  ;;  %1811 = vmatprep.subr.bf16.mxu1 %v2765_v25  ;;  %v2826_v7 = vld [vmem:[%s4105_s1 + $0x208] ss:$16 sps:$4 sm:$0xff]   ;;  %v2831_v8 = vld [vmem:[%s4105_s1 + $0x224] ss:$16 sps:$4 sm:$0xff]   ;;  %v2834_v9 = vld [vmem:[%s4105_s1 + $0x22c] ss:$16 sps:$4 sm:$0xff]  }
  0x19   :  { %v2829_v10 = vld [vmem:[%s4105_s1 + $0x220] ss:$16 sps:$4 sm:$0xff]   ;;  %v2832_v11 = vld [vmem:[%s4105_s1 + $0x228] ss:$16 sps:$4 sm:$0xff]   ;;  %v2837_v12 = vld [vmem:[%s4105_s1 + $0x244] ss:$16 sps:$4 sm:$0xff]  }
  0x1a   :  { %v2840_v13 = vld [vmem:[%s4105_s1 + $0x24c] ss:$16 sps:$4 sm:$0xff]   ;;  %v2835_v14 = vld [vmem:[%s4105_s1 + $0x240] ss:$16 sps:$4 sm:$0xff]   ;;  %v2838_v15 = vld [vmem:[%s4105_s1 + $0x248] ss:$16 sps:$4 sm:$0xff]  }
  0x1b   :  { %1640 = vmatpush1.bf16.msra.mxu0 %v2767_v26  ;;  %1812 = vmatpush1.bf16.msra.mxu1 %v2768_v27  ;;  %v2843_v16 = vld [vmem:[%s4105_s1 + $0x264] ss:$16 sps:$4 sm:$0xff]   ;;  %v2846_v17 = vld [vmem:[%s4105_s1 + $0x26c] ss:$16 sps:$4 sm:$0xff]   ;;  %v2841_v18 = vld [vmem:[%s4105_s1 + $0x260] ss:$16 sps:$4 sm:$0xff]  }
  0x1c   :  { %1641 = vmatprep.subr.bf16.mxu0 %v2769_v28  ;;  %1813 = vmatprep.subr.bf16.mxu1 %v2771_v29  ;;  %v2844_v19 = vld [vmem:[%s4105_s1 + $0x268] ss:$16 sps:$4 sm:$0xff]   ;;  %v2849_v20 = vld [vmem:[%s4105_s1 + $0x284] ss:$16 sps:$4 sm:$0xff]   ;;  %v2852_v21 = vld [vmem:[%s4105_s1 + $0x28c] ss:$16 sps:$4 sm:$0xff]  }
  0x1d   :  { %v2847_v22 = vld [vmem:[%s4105_s1 + $0x280] ss:$16 sps:$4 sm:$0xff]   ;;  %v2850_v23 = vld [vmem:[%s4105_s1 + $0x288] ss:$16 sps:$4 sm:$0xff]   ;;  %v2855_v24 = vld [vmem:[%s4105_s1 + $0x2a4] ss:$16 sps:$4 sm:$0xff]  }
  0x1e   :  { %v2858_v25 = vld [vmem:[%s4105_s1 + $0x2ac] ss:$16 sps:$4 sm:$0xff]   ;;  %v2853_v26 = vld [vmem:[%s4105_s1 + $0x2a0] ss:$16 sps:$4 sm:$0xff]   ;;  %v2856_v27 = vld [vmem:[%s4105_s1 + $0x2a8] ss:$16 sps:$4 sm:$0xff]  }
  0x1f   :  { %1642 = vmatpush1.bf16.msra.mxu0 %v2773_v30  ;;  %1814 = vmatpush1.bf16.msra.mxu1 %v2774_v31  ;;  %v2861_v28 = vld [vmem:[%s4105_s1 + $0x2c4] ss:$16 sps:$4 sm:$0xff]   ;;  %v2864_v29 = vld [vmem:[%s4105_s1 + $0x2cc] ss:$16 sps:$4 sm:$0xff]   ;;  %v2880_v46 = vld [vmem:[%s4105_s1 + $0x328] ss:$16 sps:$4 sm:$0xff]  }
  0x20   :  { %1643 = vmatprep.subr.bf16.mxu0 %v2775_v32  ;;  %1815 = vmatprep.subr.bf16.mxu1 %v2777_v33  ;;  %v3460_v30 = vld [vmem:[%s4106_s0 + $0x8] sm:$0xff]  ;;  %v2859_v32 = vld [vmem:[%s4105_s1 + $0x2c0] ss:$16 sps:$4 sm:$0xff]   ;;  %v2885_v47 = vld [vmem:[%s4105_s1 + $0x344] ss:$16 sps:$4 sm:$0xff]  }
  0x21   :  { %v3465_v31 = vld [vmem:[%s4106_s0 + $0x28] sm:$0xff] }
  0x22   :  { %v2862_v33 = vld [vmem:[%s4105_s1 + $0x2c8] ss:$16 sps:$4 sm:$0xff]  }
  0x23   :  { %1644 = vmatpush1.bf16.msra.mxu0 %v2779_v34  ;;  %1816 = vmatpush1.bf16.msra.mxu1 %v2780_v35  ;;  %v2357_v34 = vcombine.high %v3460_v30, %v3465_v31  ;;  %v2867_v35 = vld [vmem:[%s4105_s1 + $0x2e4] ss:$16 sps:$4 sm:$0xff]   ;;  %v2886_v50 = vld [vmem:[%s4105_s1 + $0x348] ss:$16 sps:$4 sm:$0xff]  }
  0x24   :  { %1645 = vmatprep.subr.bf16.mxu0 %v2781_v36  ;;  %1817 = vmatprep.subr.bf16.mxu1 %v2783_v37  ;;  %v2870_v36 = vld [vmem:[%s4105_s1 + $0x2ec] ss:$16 sps:$4 sm:$0xff]   ;;  %v2865_v37 = vld [vmem:[%s4105_s1 + $0x2e0] ss:$16 sps:$4 sm:$0xff]  }
  0x27   :  { %1646 = vmatpush1.bf16.msra.mxu0 %v2785_v38  ;;  %1818 = vmatpush1.bf16.msra.mxu1 %v2786_v39  ;;  %v2868_v38 = vld [vmem:[%s4105_s1 + $0x2e8] ss:$16 sps:$4 sm:$0xff]   ;;  %v2873_v39 = vld [vmem:[%s4105_s1 + $0x304] ss:$16 sps:$4 sm:$0xff]  }
  0x28   :  { %1647 = vmatprep.subr.bf16.mxu0 %v2787_v40  ;;  %1819 = vmatprep.subr.bf16.mxu1 %v2789_v41  ;;  %v2876_v40 = vld [vmem:[%s4105_s1 + $0x30c] ss:$16 sps:$4 sm:$0xff]   ;;  %v2871_v41 = vld [vmem:[%s4105_s1 + $0x300] ss:$16 sps:$4 sm:$0xff]  }
  0x2b   :  { %1648 = vmatpush1.bf16.msra.mxu0 %v2791_v42  ;;  %1820 = vmatpush1.bf16.msra.mxu1 %v2792_v43  ;;  %v2874_v42 = vld [vmem:[%s4105_s1 + $0x308] ss:$16 sps:$4 sm:$0xff]   ;;  %v2879_v43 = vld [vmem:[%s4105_s1 + $0x324] ss:$16 sps:$4 sm:$0xff]  }
  0x2c   :  { %1649 = vmatprep.subr.bf16.mxu0 %v2793_v44  ;;  %1821 = vmatprep.subr.bf16.mxu1 %v2795_v45  ;;  %v2882_v44 = vld [vmem:[%s4105_s1 + $0x32c] ss:$16 sps:$4 sm:$0xff]   ;;  %v2877_v45 = vld [vmem:[%s4105_s1 + $0x320] ss:$16 sps:$4 sm:$0xff]  }
  0x2f   :  { %1650 = vmatpush1.bf16.msra.mxu0 %v2797_v48  ;;  %1822 = vmatpush1.bf16.msra.mxu1 %v2798_v49  ;;  %v2888_v48 = vld [vmem:[%s4105_s1 + $0x34c] ss:$16 sps:$4 sm:$0xff]   ;;  %v2883_v49 = vld [vmem:[%s4105_s1 + $0x340] ss:$16 sps:$4 sm:$0xff]  }
  0x30   :  { %1651 = vmatprep.subr.bf16.mxu0 %v2799_v51  ;;  %1823 = vmatprep.subr.bf16.mxu1 %v2801_v52  ;;  %v2891_v51 = vld [vmem:[%s4105_s1 + $0x364] ss:$16 sps:$4 sm:$0xff]   ;;  %v2894_v52 = vld [vmem:[%s4105_s1 + $0x36c] ss:$16 sps:$4 sm:$0xff]  }
  0x33   :  { %1652 = vmatpush1.bf16.msra.mxu0 %v2803_v53  ;;  %1824 = vmatpush1.bf16.msra.mxu1 %v2804_v54  ;;  %v2889_v53 = vld [vmem:[%s4105_s1 + $0x360] ss:$16 sps:$4 sm:$0xff]   ;;  %v2892_v54 = vld [vmem:[%s4105_s1 + $0x368] ss:$16 sps:$4 sm:$0xff]  }
  0x34   :  { %1653 = vmatprep.subr.bf16.mxu0 %v2805_v55  ;;  %1825 = vmatprep.subr.bf16.mxu1 %v2807_v56  ;;  %v2897_v55 = vld [vmem:[%s4105_s1 + $0x384] ss:$16 sps:$4 sm:$0xff]   ;;  %v2900_v56 = vld [vmem:[%s4105_s1 + $0x38c] ss:$16 sps:$4 sm:$0xff]  }
  0x37   :  { %1654 = vmatpush1.bf16.msra.mxu0 %v2809_v57  ;;  %1826 = vmatpush1.bf16.msra.mxu1 %v2810_v58  ;;  %v2895_v57 = vld [vmem:[%s4105_s1 + $0x380] ss:$16 sps:$4 sm:$0xff]   ;;  %v2898_v58 = vld [vmem:[%s4105_s1 + $0x388] ss:$16 sps:$4 sm:$0xff]  }
  0x38   :  { %1655 = vmatprep.subr.bf16.mxu0 %v2811_v59  ;;  %1827 = vmatprep.subr.bf16.mxu1 %v2813_v60  ;;  %v2903_v59 = vld [vmem:[%s4105_s1 + $0x3a4] ss:$16 sps:$4 sm:$0xff]   ;;  %v2906_v60 = vld [vmem:[%s4105_s1 + $0x3ac] ss:$16 sps:$4 sm:$0xff]  }
  0x3b   :  { %1656 = vmatpush1.bf16.msra.mxu0 %v2815_v61  ;;  %1828 = vmatpush1.bf16.msra.mxu1 %v2816_v62  ;;  %v2901_v61 = vld [vmem:[%s4105_s1 + $0x3a0] ss:$16 sps:$4 sm:$0xff]   ;;  %v2904_v62 = vld [vmem:[%s4105_s1 + $0x3a8] ss:$16 sps:$4 sm:$0xff]  }
  0x3c   :  { %1657 = vmatprep.subr.bf16.mxu0 %v2817_v63  ;;  %1829 = vmatprep.subr.bf16.mxu1 %v2819_v0  ;;  %v2909_v63 = vld [vmem:[%s4105_s1 + $0x3c4] ss:$16 sps:$4 sm:$0xff]   ;;  %v2912_v0 = vld [vmem:[%s4105_s1 + $0x3cc] ss:$16 sps:$4 sm:$0xff]  }
  0x3f   :  { %1658 = vmatpush1.bf16.msra.mxu0 %v2821_v1  ;;  %1830 = vmatpush1.bf16.msra.mxu1 %v2822_v2  ;;  %v2907_v1 = vld [vmem:[%s4105_s1 + $0x3c0] ss:$16 sps:$4 sm:$0xff]   ;;  %v2910_v2 = vld [vmem:[%s4105_s1 + $0x3c8] ss:$16 sps:$4 sm:$0xff]  }
  0x40   :  { %1670 = vmatprep.subr.bf16.mxu0 %v2825_v3  ;;  %1842 = vmatprep.subr.bf16.mxu1 %v2828_v4  ;;  %v2915_v3 = vld [vmem:[%s4105_s1 + $0x3e4] ss:$16 sps:$4 sm:$0xff]   ;;  %v2918_v4 = vld [vmem:[%s4105_s1 + $0x3ec] ss:$16 sps:$4 sm:$0xff]  }
  0x42   :  { %1660 = vmatmul.mubr.bf16.vlgmr.msra.gmra.mrb[0].mxu0 %v2354_v5  ;;  %1832 = vmatmul.mubr.bf16.vlgmr.msra.gmra.mrb[0].mxu1 %v2354_v5  ;;  %v2913_v5 = vld [vmem:[%s4105_s1 + $0x3e0] ss:$16 sps:$4 sm:$0xff]  }
  0x43   :  { %1671 = vmatpush1.bf16.msra.mxu0 %v2823_v6  ;;  %1843 = vmatpush1.bf16.msra.mxu1 %v2826_v7  ;;  %v2916_v6 = vld [vmem:[%s4105_s1 + $0x3e8] ss:$16 sps:$4 sm:$0xff]   ;;  %v2921_v7 = vld [vmem:[%s4105_s1 + $0x404] ss:$16 sps:$4 sm:$0xff]  }
  0x44   :  { %1672 = vmatprep.subr.bf16.mxu0 %v2831_v8  ;;  %1844 = vmatprep.subr.bf16.mxu1 %v2834_v9  ;;  %v2924_v8 = vld [vmem:[%s4105_s1 + $0x40c] ss:$16 sps:$4 sm:$0xff]   ;;  %v2356_v9 = vcombine.low %v3460_v30, %v3465_v31  ;;  %v2946_v30 = vld [vmem:[%s4105_s1 + $0x488] ss:$16 sps:$4 sm:$0xff]   ;;  %v2951_v31 = vld [vmem:[%s4105_s1 + $0x4a4] ss:$16 sps:$4 sm:$0xff]  }
  0x45   :  { %1702 = vmatprep.mubr.bf16.mxu0 %v2357_v34  ;;  %1874 = vmatprep.mubr.bf16.mxu1 %v2357_v34  ;;  %v2952_v34 = vld [vmem:[%s4105_s1 + $0x4a8] ss:$16 sps:$4 sm:$0xff]  }
  0x47   :  { %1673 = vmatpush1.bf16.msra.mxu0 %v2829_v10  ;;  %1845 = vmatpush1.bf16.msra.mxu1 %v2832_v11  ;;  %v2919_v10 = vld [vmem:[%s4105_s1 + $0x400] ss:$16 sps:$4 sm:$0xff]   ;;  %v2922_v11 = vld [vmem:[%s4105_s1 + $0x408] ss:$16 sps:$4 sm:$0xff]  }
  0x48   :  { %1674 = vmatprep.subr.bf16.mxu0 %v2837_v12  ;;  %1846 = vmatprep.subr.bf16.mxu1 %v2840_v13  ;;  %v2927_v12 = vld [vmem:[%s4105_s1 + $0x424] ss:$16 sps:$4 sm:$0xff]   ;;  %v2930_v13 = vld [vmem:[%s4105_s1 + $0x42c] ss:$16 sps:$4 sm:$0xff]  }
  0x4b   :  { %1675 = vmatpush1.bf16.msra.mxu0 %v2835_v14  ;;  %1847 = vmatpush1.bf16.msra.mxu1 %v2838_v15  ;;  %v3606_v14 = vld [vmem:[%s4106_s0 + $0x10] sm:$0xff] }
  0x4c   :  { %1676 = vmatprep.subr.bf16.mxu0 %v2843_v16  ;;  %1848 = vmatprep.subr.bf16.mxu1 %v2846_v17  ;;  %v3611_v15 = vld [vmem:[%s4106_s0 + $0x30] sm:$0xff] }
  0x4d   :  { %v2359_v16 = vcombine.high %v3606_v14, %v3611_v15  ;;  %v2925_v17 = vld [vmem:[%s4105_s1 + $0x420] ss:$16 sps:$4 sm:$0xff]  }
  0x4f   :  { %1677 = vmatpush1.bf16.msra.mxu0 %v2841_v18  ;;  %1849 = vmatpush1.bf16.msra.mxu1 %v2844_v19  ;;  %v2928_v18 = vld [vmem:[%s4105_s1 + $0x428] ss:$16 sps:$4 sm:$0xff]   ;;  %v2933_v19 = vld [vmem:[%s4105_s1 + $0x444] ss:$16 sps:$4 sm:$0xff]  }
  0x50   :  { %1678 = vmatprep.subr.bf16.mxu0 %v2849_v20  ;;  %1850 = vmatprep.subr.bf16.mxu1 %v2852_v21  ;;  %v2936_v20 = vld [vmem:[%s4105_s1 + $0x44c] ss:$16 sps:$4 sm:$0xff]   ;;  %v2931_v21 = vld [vmem:[%s4105_s1 + $0x440] ss:$16 sps:$4 sm:$0xff]  }
  0x53   :  { %1679 = vmatpush1.bf16.msra.mxu0 %v2847_v22  ;;  %1851 = vmatpush1.bf16.msra.mxu1 %v2850_v23  ;;  %v2934_v22 = vld [vmem:[%s4105_s1 + $0x448] ss:$16 sps:$4 sm:$0xff]   ;;  %v2939_v23 = vld [vmem:[%s4105_s1 + $0x464] ss:$16 sps:$4 sm:$0xff]  }
  0x54   :  { %1680 = vmatprep.subr.bf16.mxu0 %v2855_v24  ;;  %1852 = vmatprep.subr.bf16.mxu1 %v2858_v25  ;;  %v2942_v24 = vld [vmem:[%s4105_s1 + $0x46c] ss:$16 sps:$4 sm:$0xff]   ;;  %v2937_v25 = vld [vmem:[%s4105_s1 + $0x460] ss:$16 sps:$4 sm:$0xff]  }
  0x57   :  { %1681 = vmatpush1.bf16.msra.mxu0 %v2853_v26  ;;  %1853 = vmatpush1.bf16.msra.mxu1 %v2856_v27  ;;  %v2940_v26 = vld [vmem:[%s4105_s1 + $0x468] ss:$16 sps:$4 sm:$0xff]   ;;  %v2945_v27 = vld [vmem:[%s4105_s1 + $0x484] ss:$16 sps:$4 sm:$0xff]  }
  0x58   :  { %1682 = vmatprep.subr.bf16.mxu0 %v2861_v28  ;;  %1854 = vmatprep.subr.bf16.mxu1 %v2864_v29  ;;  %v2948_v28 = vld [vmem:[%s4105_s1 + $0x48c] ss:$16 sps:$4 sm:$0xff]   ;;  %v2943_v29 = vld [vmem:[%s4105_s1 + $0x480] ss:$16 sps:$4 sm:$0xff]  }
  0x5b   :  { %1683 = vmatpush1.bf16.msra.mxu0 %v2859_v32  ;;  %1855 = vmatpush1.bf16.msra.mxu1 %v2862_v33  ;;  %v2954_v32 = vld [vmem:[%s4105_s1 + $0x4ac] ss:$16 sps:$4 sm:$0xff]   ;;  %v2949_v33 = vld [vmem:[%s4105_s1 + $0x4a0] ss:$16 sps:$4 sm:$0xff]  }
  0x5c   :  { %1684 = vmatprep.subr.bf16.mxu0 %v2867_v35  ;;  %1856 = vmatprep.subr.bf16.mxu1 %v2870_v36  ;;  %v2957_v35 = vld [vmem:[%s4105_s1 + $0x4c4] ss:$16 sps:$4 sm:$0xff]   ;;  %v2960_v36 = vld [vmem:[%s4105_s1 + $0x4cc] ss:$16 sps:$4 sm:$0xff]  }
  0x5f   :  { %1685 = vmatpush1.bf16.msra.mxu0 %v2865_v37  ;;  %1857 = vmatpush1.bf16.msra.mxu1 %v2868_v38  ;;  %v2955_v37 = vld [vmem:[%s4105_s1 + $0x4c0] ss:$16 sps:$4 sm:$0xff]   ;;  %v2958_v38 = vld [vmem:[%s4105_s1 + $0x4c8] ss:$16 sps:$4 sm:$0xff]  }
  0x60   :  { %1686 = vmatprep.subr.bf16.mxu0 %v2873_v39  ;;  %1858 = vmatprep.subr.bf16.mxu1 %v2876_v40  ;;  %v2963_v39 = vld [vmem:[%s4105_s1 + $0x4e4] ss:$16 sps:$4 sm:$0xff]   ;;  %v2966_v40 = vld [vmem:[%s4105_s1 + $0x4ec] ss:$16 sps:$4 sm:$0xff]  }
  0x63   :  { %1687 = vmatpush1.bf16.msra.mxu0 %v2871_v41  ;;  %1859 = vmatpush1.bf16.msra.mxu1 %v2874_v42  ;;  %v2961_v41 = vld [vmem:[%s4105_s1 + $0x4e0] ss:$16 sps:$4 sm:$0xff]   ;;  %v2964_v42 = vld [vmem:[%s4105_s1 + $0x4e8] ss:$16 sps:$4 sm:$0xff]  }
  0x64   :  { %1688 = vmatprep.subr.bf16.mxu0 %v2879_v43  ;;  %1860 = vmatprep.subr.bf16.mxu1 %v2882_v44  ;;  %v2969_v43 = vld [vmem:[%s4105_s1 + $0x504] ss:$16 sps:$4 sm:$0xff]   ;;  %v2972_v44 = vld [vmem:[%s4105_s1 + $0x50c] ss:$16 sps:$4 sm:$0xff]  }
  0x67   :  { %1689 = vmatpush1.bf16.msra.mxu0 %v2877_v45  ;;  %1861 = vmatpush1.bf16.msra.mxu1 %v2880_v46  ;;  %v2967_v45 = vld [vmem:[%s4105_s1 + $0x500] ss:$16 sps:$4 sm:$0xff]   ;;  %v2970_v46 = vld [vmem:[%s4105_s1 + $0x508] ss:$16 sps:$4 sm:$0xff]  }
  0x68   :  { %1690 = vmatprep.subr.bf16.mxu0 %v2885_v47  ;;  %1862 = vmatprep.subr.bf16.mxu1 %v2888_v48  ;;  %v2975_v47 = vld [vmem:[%s4105_s1 + $0x524] ss:$16 sps:$4 sm:$0xff]   ;;  %v2978_v48 = vld [vmem:[%s4105_s1 + $0x52c] ss:$16 sps:$4 sm:$0xff]  }
  0x6b   :  { %1691 = vmatpush1.bf16.msra.mxu0 %v2883_v49  ;;  %1863 = vmatpush1.bf16.msra.mxu1 %v2886_v50  ;;  %v2973_v49 = vld [vmem:[%s4105_s1 + $0x520] ss:$16 sps:$4 sm:$0xff]   ;;  %v2976_v50 = vld [vmem:[%s4105_s1 + $0x528] ss:$16 sps:$4 sm:$0xff]  }
  0x6c   :  { %1692 = vmatprep.subr.bf16.mxu0 %v2891_v51  ;;  %1864 = vmatprep.subr.bf16.mxu1 %v2894_v52  ;;  %v2981_v51 = vld [vmem:[%s4105_s1 + $0x544] ss:$16 sps:$4 sm:$0xff]   ;;  %v2984_v52 = vld [vmem:[%s4105_s1 + $0x54c] ss:$16 sps:$4 sm:$0xff]  }
  0x6f   :  { %1693 = vmatpush1.bf16.msra.mxu0 %v2889_v53  ;;  %1865 = vmatpush1.bf16.msra.mxu1 %v2892_v54  ;;  %v2979_v53 = vld [vmem:[%s4105_s1 + $0x540] ss:$16 sps:$4 sm:$0xff]   ;;  %v2982_v54 = vld [vmem:[%s4105_s1 + $0x548] ss:$16 sps:$4 sm:$0xff]  }
  0x70   :  { %1694 = vmatprep.subr.bf16.mxu0 %v2897_v55  ;;  %1866 = vmatprep.subr.bf16.mxu1 %v2900_v56  ;;  %v2987_v55 = vld [vmem:[%s4105_s1 + $0x564] ss:$16 sps:$4 sm:$0xff]   ;;  %v2990_v56 = vld [vmem:[%s4105_s1 + $0x56c] ss:$16 sps:$4 sm:$0xff]  }
  0x73   :  { %1695 = vmatpush1.bf16.msra.mxu0 %v2895_v57  ;;  %1867 = vmatpush1.bf16.msra.mxu1 %v2898_v58  ;;  %v2985_v57 = vld [vmem:[%s4105_s1 + $0x560] ss:$16 sps:$4 sm:$0xff]   ;;  %v2988_v58 = vld [vmem:[%s4105_s1 + $0x568] ss:$16 sps:$4 sm:$0xff]  }
  0x74   :  { %1696 = vmatprep.subr.bf16.mxu0 %v2903_v59  ;;  %1868 = vmatprep.subr.bf16.mxu1 %v2906_v60  ;;  %v2993_v59 = vld [vmem:[%s4105_s1 + $0x584] ss:$16 sps:$4 sm:$0xff]   ;;  %v2996_v60 = vld [vmem:[%s4105_s1 + $0x58c] ss:$16 sps:$4 sm:$0xff]  }
  0x77   :  { %1697 = vmatpush1.bf16.msra.mxu0 %v2901_v61  ;;  %1869 = vmatpush1.bf16.msra.mxu1 %v2904_v62  ;;  %v2991_v61 = vld [vmem:[%s4105_s1 + $0x580] ss:$16 sps:$4 sm:$0xff]   ;;  %v2994_v62 = vld [vmem:[%s4105_s1 + $0x588] ss:$16 sps:$4 sm:$0xff]  }
  0x78   :  { %1698 = vmatprep.subr.bf16.mxu0 %v2909_v63  ;;  %1870 = vmatprep.subr.bf16.mxu1 %v2912_v0  ;;  %v2999_v63 = vld [vmem:[%s4105_s1 + $0x5a4] ss:$16 sps:$4 sm:$0xff]   ;;  %v3002_v0 = vld [vmem:[%s4105_s1 + $0x5ac] ss:$16 sps:$4 sm:$0xff]  }
  0x7b   :  { %1699 = vmatpush1.bf16.msra.mxu0 %v2907_v1  ;;  %1871 = vmatpush1.bf16.msra.mxu1 %v2910_v2  ;;  %v2997_v1 = vld [vmem:[%s4105_s1 + $0x5a0] ss:$16 sps:$4 sm:$0xff]   ;;  %v3000_v2 = vld [vmem:[%s4105_s1 + $0x5a8] ss:$16 sps:$4 sm:$0xff]  }
  0x7c   :  { %1700 = vmatprep.subr.bf16.mxu0 %v2915_v3  ;;  %1872 = vmatprep.subr.bf16.mxu1 %v2918_v4  ;;  %v3005_v3 = vld [vmem:[%s4105_s1 + $0x5c4] ss:$16 sps:$4 sm:$0xff]   ;;  %v3008_v4 = vld [vmem:[%s4105_s1 + $0x5cc] ss:$16 sps:$4 sm:$0xff]  }
  0x7f   :  { %1701 = vmatpush1.bf16.msra.mxu0 %v2913_v5  ;;  %1873 = vmatpush1.bf16.msra.mxu1 %v2916_v6  ;;  %v3003_v5 = vld [vmem:[%s4105_s1 + $0x5c0] ss:$16 sps:$4 sm:$0xff]   ;;  %v3006_v6 = vld [vmem:[%s4105_s1 + $0x5c8] ss:$16 sps:$4 sm:$0xff]  }
  0x80   :  { %1713 = vmatprep.subr.bf16.mxu0 %v2921_v7  ;;  %1885 = vmatprep.subr.bf16.mxu1 %v2924_v8  ;;  %v3011_v7 = vld [vmem:[%s4105_s1 + $0x5e4] ss:$16 sps:$4 sm:$0xff]   ;;  %v3014_v8 = vld [vmem:[%s4105_s1 + $0x5ec] ss:$16 sps:$4 sm:$0xff]  }
  0x82   :  { %1703 = vmatmul.mubr.bf16.vlgmr.msra.gmra.mrb[0].mxu0 %v2356_v9  ;;  %1875 = vmatmul.mubr.bf16.vlgmr.msra.gmra.mrb[0].mxu1 %v2356_v9  ;;  %v3009_v9 = vld [vmem:[%s4105_s1 + $0x5e0] ss:$16 sps:$4 sm:$0xff]  }
  0x83   :  { %1714 = vmatpush1.bf16.msra.mxu0 %v2919_v10  ;;  %1886 = vmatpush1.bf16.msra.mxu1 %v2922_v11  ;;  %v3012_v10 = vld [vmem:[%s4105_s1 + $0x5e8] ss:$16 sps:$4 sm:$0xff]   ;;  %v3017_v11 = vld [vmem:[%s4105_s1 + $0x604] ss:$16 sps:$4 sm:$0xff]  }
  0x84   :  { %1715 = vmatprep.subr.bf16.mxu0 %v2927_v12  ;;  %1887 = vmatprep.subr.bf16.mxu1 %v2930_v13  ;;  %v3020_v12 = vld [vmem:[%s4105_s1 + $0x60c] ss:$16 sps:$4 sm:$0xff]   ;;  %v3015_v13 = vld [vmem:[%s4105_s1 + $0x600] ss:$16 sps:$4 sm:$0xff]  }
  0x85   :  { %1745 = vmatprep.mubr.bf16.mxu0 %v2359_v16  ;;  %1917 = vmatprep.mubr.bf16.mxu1 %v2359_v16  ;;  %v3018_v16 = vld [vmem:[%s4105_s1 + $0x608] ss:$16 sps:$4 sm:$0xff]  }
  0x87   :  { %1716 = vmatpush1.bf16.msra.mxu0 %v2925_v17  ;;  %1888 = vmatpush1.bf16.msra.mxu1 %v2928_v18  ;;  %v3804_v17 = vld [vmem:[%s4106_s0 + $0x18] sm:$0xff]  ;;  %v2358_v18 = vcombine.low %v3606_v14, %v3611_v15  ;;  %v3021_v14 = vld [vmem:[%s4105_s1 + $0x620] ss:$16 sps:$4 sm:$0xff]  }
  0x88   :  { %1717 = vmatprep.subr.bf16.mxu0 %v2933_v19  ;;  %1889 = vmatprep.subr.bf16.mxu1 %v2936_v20  ;;  %v3811_v19 = vld [vmem:[%s4106_s0 + $0x38] sm:$0xff]  ;;  %v3023_v20 = vld [vmem:[%s4105_s1 + $0x624] ss:$16 sps:$4 sm:$0xff]  }
  0x89   :  { %v3024_v15 = vld [vmem:[%s4105_s1 + $0x628] ss:$16 sps:$4 sm:$0xff]  }
  0x8b   :  { %1718 = vmatpush1.bf16.msra.mxu0 %v2931_v21  ;;  %1890 = vmatpush1.bf16.msra.mxu1 %v2934_v22  ;;  %v3026_v21 = vld [vmem:[%s4105_s1 + $0x62c] ss:$16 sps:$4 sm:$0xff]   ;;  %v2361_v22 = vcombine.high %v3804_v17, %v3811_v19 }
  0x8c   :  { %1719 = vmatprep.subr.bf16.mxu0 %v2939_v23  ;;  %1891 = vmatprep.subr.bf16.mxu1 %v2942_v24  ;;  %v3029_v23 = vld [vmem:[%s4105_s1 + $0x644] ss:$16 sps:$4 sm:$0xff]   ;;  %v3032_v24 = vld [vmem:[%s4105_s1 + $0x64c] ss:$16 sps:$4 sm:$0xff]  }
  0x8f   :  { %1720 = vmatpush1.bf16.msra.mxu0 %v2937_v25  ;;  %1892 = vmatpush1.bf16.msra.mxu1 %v2940_v26  ;;  %v3027_v25 = vld [vmem:[%s4105_s1 + $0x640] ss:$16 sps:$4 sm:$0xff]   ;;  %v3030_v26 = vld [vmem:[%s4105_s1 + $0x648] ss:$16 sps:$4 sm:$0xff]  }
  0x90   :  { %1721 = vmatprep.subr.bf16.mxu0 %v2945_v27  ;;  %1893 = vmatprep.subr.bf16.mxu1 %v2948_v28  ;;  %v3035_v27 = vld [vmem:[%s4105_s1 + $0x664] ss:$16 sps:$4 sm:$0xff]   ;;  %v3038_v28 = vld [vmem:[%s4105_s1 + $0x66c] ss:$16 sps:$4 sm:$0xff]  }
  0x93   :  { %1722 = vmatpush1.bf16.msra.mxu0 %v2943_v29  ;;  %1894 = vmatpush1.bf16.msra.mxu1 %v2946_v30  ;;  %v3033_v29 = vld [vmem:[%s4105_s1 + $0x660] ss:$16 sps:$4 sm:$0xff]   ;;  %v3036_v30 = vld [vmem:[%s4105_s1 + $0x668] ss:$16 sps:$4 sm:$0xff]  }
  0x94   :  { %1723 = vmatprep.subr.bf16.mxu0 %v2951_v31  ;;  %1895 = vmatprep.subr.bf16.mxu1 %v2954_v32  ;;  %v3041_v31 = vld [vmem:[%s4105_s1 + $0x684] ss:$16 sps:$4 sm:$0xff]   ;;  %v3044_v32 = vld [vmem:[%s4105_s1 + $0x68c] ss:$16 sps:$4 sm:$0xff]  }
  0x97   :  { %1724 = vmatpush1.bf16.msra.mxu0 %v2949_v33  ;;  %1896 = vmatpush1.bf16.msra.mxu1 %v2952_v34  ;;  %v3039_v33 = vld [vmem:[%s4105_s1 + $0x680] ss:$16 sps:$4 sm:$0xff]   ;;  %v3042_v34 = vld [vmem:[%s4105_s1 + $0x688] ss:$16 sps:$4 sm:$0xff]  }
  0x98   :  { %1725 = vmatprep.subr.bf16.mxu0 %v2957_v35  ;;  %1897 = vmatprep.subr.bf16.mxu1 %v2960_v36  ;;  %v3047_v35 = vld [vmem:[%s4105_s1 + $0x6a4] ss:$16 sps:$4 sm:$0xff]   ;;  %v3050_v36 = vld [vmem:[%s4105_s1 + $0x6ac] ss:$16 sps:$4 sm:$0xff]  }
  0x9b   :  { %1726 = vmatpush1.bf16.msra.mxu0 %v2955_v37  ;;  %1898 = vmatpush1.bf16.msra.mxu1 %v2958_v38  ;;  %v3045_v37 = vld [vmem:[%s4105_s1 + $0x6a0] ss:$16 sps:$4 sm:$0xff]   ;;  %v3048_v38 = vld [vmem:[%s4105_s1 + $0x6a8] ss:$16 sps:$4 sm:$0xff]  }
  0x9c   :  { %1727 = vmatprep.subr.bf16.mxu0 %v2963_v39  ;;  %1899 = vmatprep.subr.bf16.mxu1 %v2966_v40  ;;  %v3053_v39 = vld [vmem:[%s4105_s1 + $0x6c4] ss:$16 sps:$4 sm:$0xff]   ;;  %v3056_v40 = vld [vmem:[%s4105_s1 + $0x6cc] ss:$16 sps:$4 sm:$0xff]  }
  0x9f   :  { %1728 = vmatpush1.bf16.msra.mxu0 %v2961_v41  ;;  %1900 = vmatpush1.bf16.msra.mxu1 %v2964_v42  ;;  %v3051_v41 = vld [vmem:[%s4105_s1 + $0x6c0] ss:$16 sps:$4 sm:$0xff]   ;;  %v3054_v42 = vld [vmem:[%s4105_s1 + $0x6c8] ss:$16 sps:$4 sm:$0xff]  }
  0xa0   :  { %1729 = vmatprep.subr.bf16.mxu0 %v2969_v43  ;;  %1901 = vmatprep.subr.bf16.mxu1 %v2972_v44  ;;  %v3059_v43 = vld [vmem:[%s4105_s1 + $0x6e4] ss:$16 sps:$4 sm:$0xff]   ;;  %v3062_v44 = vld [vmem:[%s4105_s1 + $0x6ec] ss:$16 sps:$4 sm:$0xff]  }
  0xa3   :  { %1730 = vmatpush1.bf16.msra.mxu0 %v2967_v45  ;;  %1902 = vmatpush1.bf16.msra.mxu1 %v2970_v46  ;;  %v3057_v45 = vld [vmem:[%s4105_s1 + $0x6e0] ss:$16 sps:$4 sm:$0xff]   ;;  %v3060_v46 = vld [vmem:[%s4105_s1 + $0x6e8] ss:$16 sps:$4 sm:$0xff]  }
  0xa4   :  { %1731 = vmatprep.subr.bf16.mxu0 %v2975_v47  ;;  %1903 = vmatprep.subr.bf16.mxu1 %v2978_v48  ;;  %v3065_v47 = vld [vmem:[%s4105_s1 + $0x704] ss:$16 sps:$4 sm:$0xff]   ;;  %v3068_v48 = vld [vmem:[%s4105_s1 + $0x70c] ss:$16 sps:$4 sm:$0xff]  }
  0xa7   :  { %1732 = vmatpush1.bf16.msra.mxu0 %v2973_v49  ;;  %1904 = vmatpush1.bf16.msra.mxu1 %v2976_v50  ;;  %v3063_v49 = vld [vmem:[%s4105_s1 + $0x700] ss:$16 sps:$4 sm:$0xff]   ;;  %v3066_v50 = vld [vmem:[%s4105_s1 + $0x708] ss:$16 sps:$4 sm:$0xff]  }
  0xa8   :  { %1733 = vmatprep.subr.bf16.mxu0 %v2981_v51  ;;  %1905 = vmatprep.subr.bf16.mxu1 %v2984_v52  ;;  %v3071_v51 = vld [vmem:[%s4105_s1 + $0x724] ss:$16 sps:$4 sm:$0xff]   ;;  %v3074_v52 = vld [vmem:[%s4105_s1 + $0x72c] ss:$16 sps:$4 sm:$0xff]  }
  0xab   :  { %1734 = vmatpush1.bf16.msra.mxu0 %v2979_v53  ;;  %1906 = vmatpush1.bf16.msra.mxu1 %v2982_v54  ;;  %v3069_v53 = vld [vmem:[%s4105_s1 + $0x720] ss:$16 sps:$4 sm:$0xff]   ;;  %v3072_v54 = vld [vmem:[%s4105_s1 + $0x728] ss:$16 sps:$4 sm:$0xff]  }
  0xac   :  { %1735 = vmatprep.subr.bf16.mxu0 %v2987_v55  ;;  %1907 = vmatprep.subr.bf16.mxu1 %v2990_v56  ;;  %v3077_v55 = vld [vmem:[%s4105_s1 + $0x744] ss:$16 sps:$4 sm:$0xff]   ;;  %v3080_v56 = vld [vmem:[%s4105_s1 + $0x74c] ss:$16 sps:$4 sm:$0xff]  }
  0xaf   :  { %1736 = vmatpush1.bf16.msra.mxu0 %v2985_v57  ;;  %1908 = vmatpush1.bf16.msra.mxu1 %v2988_v58  ;;  %v3075_v57 = vld [vmem:[%s4105_s1 + $0x740] ss:$16 sps:$4 sm:$0xff]   ;;  %v3078_v58 = vld [vmem:[%s4105_s1 + $0x748] ss:$16 sps:$4 sm:$0xff]  }
  0xb0   :  { %1737 = vmatprep.subr.bf16.mxu0 %v2993_v59  ;;  %1909 = vmatprep.subr.bf16.mxu1 %v2996_v60  ;;  %v3083_v59 = vld [vmem:[%s4105_s1 + $0x764] ss:$16 sps:$4 sm:$0xff]   ;;  %v3086_v60 = vld [vmem:[%s4105_s1 + $0x76c] ss:$16 sps:$4 sm:$0xff]  }
  0xb3   :  { %1738 = vmatpush1.bf16.msra.mxu0 %v2991_v61  ;;  %1910 = vmatpush1.bf16.msra.mxu1 %v2994_v62  ;;  %v3081_v61 = vld [vmem:[%s4105_s1 + $0x760] ss:$16 sps:$4 sm:$0xff]   ;;  %v3084_v62 = vld [vmem:[%s4105_s1 + $0x768] ss:$16 sps:$4 sm:$0xff]  }
  0xb4   :  { %1739 = vmatprep.subr.bf16.mxu0 %v2999_v63  ;;  %1911 = vmatprep.subr.bf16.mxu1 %v3002_v0  ;;  %v3089_v63 = vld [vmem:[%s4105_s1 + $0x784] ss:$16 sps:$4 sm:$0xff]   ;;  %v3092_v0 = vld [vmem:[%s4105_s1 + $0x78c] ss:$16 sps:$4 sm:$0xff]  }
  0xb7   :  { %1740 = vmatpush1.bf16.msra.mxu0 %v2997_v1  ;;  %1912 = vmatpush1.bf16.msra.mxu1 %v3000_v2  ;;  %v3087_v1 = vld [vmem:[%s4105_s1 + $0x780] ss:$16 sps:$4 sm:$0xff]   ;;  %v3090_v2 = vld [vmem:[%s4105_s1 + $0x788] ss:$16 sps:$4 sm:$0xff]  }
  0xb8   :  { %1741 = vmatprep.subr.bf16.mxu0 %v3005_v3  ;;  %1913 = vmatprep.subr.bf16.mxu1 %v3008_v4  ;;  %v3095_v3 = vld [vmem:[%s4105_s1 + $0x7a4] ss:$16 sps:$4 sm:$0xff]   ;;  %v3098_v4 = vld [vmem:[%s4105_s1 + $0x7ac] ss:$16 sps:$4 sm:$0xff]  }
  0xbb   :  { %1742 = vmatpush1.bf16.msra.mxu0 %v3003_v5  ;;  %1914 = vmatpush1.bf16.msra.mxu1 %v3006_v6  ;;  %v3093_v5 = vld [vmem:[%s4105_s1 + $0x7a0] ss:$16 sps:$4 sm:$0xff]   ;;  %v3096_v6 = vld [vmem:[%s4105_s1 + $0x7a8] ss:$16 sps:$4 sm:$0xff]  }
  0xbc   :  { %1743 = vmatprep.subr.bf16.mxu0 %v3011_v7  ;;  %1915 = vmatprep.subr.bf16.mxu1 %v3014_v8  ;;  %v3101_v7 = vld [vmem:[%s4105_s1 + $0x7c4] ss:$16 sps:$4 sm:$0xff]   ;;  %v3104_v8 = vld [vmem:[%s4105_s1 + $0x7cc] ss:$16 sps:$4 sm:$0xff]  }
  0xbf   :  { %1744 = vmatpush1.bf16.msra.mxu0 %v3009_v9  ;;  %1916 = vmatpush1.bf16.msra.mxu1 %v3012_v10  ;;  %v3099_v9 = vld [vmem:[%s4105_s1 + $0x7c0] ss:$16 sps:$4 sm:$0xff]   ;;  %v3102_v10 = vld [vmem:[%s4105_s1 + $0x7c8] ss:$16 sps:$4 sm:$0xff]  }
  0xc0   :  { %1756 = vmatprep.subr.bf16.mxu0 %v3017_v11  ;;  %1928 = vmatprep.subr.bf16.mxu1 %v3020_v12  ;;  %v3107_v11 = vld [vmem:[%s4105_s1 + $0x7e4] ss:$16 sps:$4 sm:$0xff]   ;;  %v3110_v12 = vld [vmem:[%s4105_s1 + $0x7ec] ss:$16 sps:$4 sm:$0xff]  }
  0xc2   :  { %1746 = vmatmul.mubr.bf16.vlgmr.msra.gmra.mrb[0].mxu0 %v2358_v18  ;;  %1918 = vmatmul.mubr.bf16.vlgmr.msra.gmra.mrb[0].mxu1 %v2358_v18  ;;  %v3111_v18 = vld [vmem:[%s4107_s3 + $0x40] sm:$0xff]  }
  0xc3   :  { %1757 = vmatpush1.bf16.msra.mxu0 %v3015_v13  ;;  %1929 = vmatpush1.bf16.msra.mxu1 %v3018_v16  ;;  %v3105_v13 = vld [vmem:[%s4105_s1 + $0x7e0] ss:$16 sps:$4 sm:$0xff]   ;;  %v3108_v16 = vld [vmem:[%s4105_s1 + $0x7e8] ss:$16 sps:$4 sm:$0xff]  }
  0xc4   :  { %1758 = vmatprep.subr.bf16.mxu0 %v3023_v20  ;;  %1930 = vmatprep.subr.bf16.mxu1 %v3026_v21  ;;  %v3112_v20 = vld [vmem:[%s4107_s3 + $0xc0] sm:$0xff]   ;;  %v2360_v21 = vcombine.low %v3804_v17, %v3811_v19  ;;  %v3116_v17 = vld [vmem:[%s4107_s3 + $0xc8] sm:$0xff]  }
  0xc5   :  { %1788 = vmatprep.mubr.bf16.mxu0 %v2361_v22  ;;  %1960 = vmatprep.mubr.bf16.mxu1 %v2361_v22  ;;  %v3115_v22 = vld [vmem:[%s4107_s3 + $0x48] sm:$0xff]  }
  0xc6   :  { %v3117_v19 = vld [vmem:[%s4107_s3 + $0x8] sm:$0xff]  }
  0xc7   :  { %1759 = vmatpush1.bf16.msra.mxu0 %v3021_v14  ;;  %1931 = vmatpush1.bf16.msra.mxu1 %v3024_v15  ;;  %v3113_v14 = vld [vmem:[%s4107_s3] sm:$0xff]  }
  0xc8   :  { %1760 = vmatprep.subr.bf16.mxu0 %v3029_v23  ;;  %1932 = vmatprep.subr.bf16.mxu1 %v3032_v24  ;;  %v3114_v15 = vld [vmem:[%s4107_s3 + $0x80] sm:$0xff]   ;;  %v3118_v23 = vld [vmem:[%s4107_s3 + $0x88] sm:$0xff]   ;;  %v3119_v24 = vld [vmem:[%s4107_s3 + $0x50] sm:$0xff]  }
  0xcb   :  { %1761 = vmatpush1.bf16.msra.mxu0 %v3027_v25  ;;  %1933 = vmatpush1.bf16.msra.mxu1 %v3030_v26  ;;  %v3120_v25 = vld [vmem:[%s4107_s3 + $0xd0] sm:$0xff]  }
  0xcc   :  { %1762 = vmatprep.subr.bf16.mxu0 %v3035_v27  ;;  %1934 = vmatprep.subr.bf16.mxu1 %v3038_v28  ;;  %v3121_v26 = vld [vmem:[%s4107_s3 + $0x10] sm:$0xff]   ;;  %v3123_v28 = vld [vmem:[%s4107_s3 + $0x58] sm:$0xff]  }
  0xcd   :  { %v3122_v27 = vld [vmem:[%s4107_s3 + $0x90] sm:$0xff]  }
  0xcf   :  { %1763 = vmatpush1.bf16.msra.mxu0 %v3033_v29  ;;  %1935 = vmatpush1.bf16.msra.mxu1 %v3036_v30  ;;  %v3124_v29 = vld [vmem:[%s4107_s3 + $0xd8] sm:$0xff]  }
  0xd0   :  { %1764 = vmatprep.subr.bf16.mxu0 %v3041_v31  ;;  %1936 = vmatprep.subr.bf16.mxu1 %v3044_v32  ;;  %v3125_v30 = vld [vmem:[%s4107_s3 + $0x18] sm:$0xff]   ;;  %v3127_v32 = vld [vmem:[%s4107_s3 + $0x60] sm:$0xff]  }
  0xd1   :  { %v3126_v31 = vld [vmem:[%s4107_s3 + $0x98] sm:$0xff]  }
  0xd3   :  { %1765 = vmatpush1.bf16.msra.mxu0 %v3039_v33  ;;  %1937 = vmatpush1.bf16.msra.mxu1 %v3042_v34  ;;  %v3128_v33 = vld [vmem:[%s4107_s3 + $0xe0] sm:$0xff]  }
  0xd4   :  { %1766 = vmatprep.subr.bf16.mxu0 %v3047_v35  ;;  %1938 = vmatprep.subr.bf16.mxu1 %v3050_v36  ;;  %v3129_v34 = vld [vmem:[%s4107_s3 + $0x20] sm:$0xff]   ;;  %v3131_v36 = vld [vmem:[%s4107_s3 + $0x68] sm:$0xff]  }
  0xd5   :  { %v3130_v35 = vld [vmem:[%s4107_s3 + $0xa0] sm:$0xff]  }
  0xd7   :  { %1767 = vmatpush1.bf16.msra.mxu0 %v3045_v37  ;;  %1939 = vmatpush1.bf16.msra.mxu1 %v3048_v38  ;;  %v3132_v37 = vld [vmem:[%s4107_s3 + $0xe8] sm:$0xff]  }
  0xd8   :  { %1768 = vmatprep.subr.bf16.mxu0 %v3053_v39  ;;  %1940 = vmatprep.subr.bf16.mxu1 %v3056_v40  ;;  %v3133_v38 = vld [vmem:[%s4107_s3 + $0x28] sm:$0xff]   ;;  %v3135_v40 = vld [vmem:[%s4107_s3 + $0x70] sm:$0xff]  }
  0xd9   :  { %v3134_v39 = vld [vmem:[%s4107_s3 + $0xa8] sm:$0xff]  }
  0xdb   :  { %1769 = vmatpush1.bf16.msra.mxu0 %v3051_v41  ;;  %1941 = vmatpush1.bf16.msra.mxu1 %v3054_v42  ;;  %v3136_v41 = vld [vmem:[%s4107_s3 + $0xf0] sm:$0xff]  }
  0xdc   :  { %1770 = vmatprep.subr.bf16.mxu0 %v3059_v43  ;;  %1942 = vmatprep.subr.bf16.mxu1 %v3062_v44  ;;  %v3137_v42 = vld [vmem:[%s4107_s3 + $0x30] sm:$0xff]   ;;  %v3139_v44 = vld [vmem:[%s4107_s3 + $0x78] sm:$0xff]  }
  0xdd   :  { %v3138_v43 = vld [vmem:[%s4107_s3 + $0xb0] sm:$0xff]  }
  0xdf   :  { %1771 = vmatpush1.bf16.msra.mxu0 %v3057_v45  ;;  %1943 = vmatpush1.bf16.msra.mxu1 %v3060_v46  ;;  %v3140_v45 = vld [vmem:[%s4107_s3 + $0xf8] sm:$0xff]  }
  0xe0   :  { %1772 = vmatprep.subr.bf16.mxu0 %v3065_v47  ;;  %1944 = vmatprep.subr.bf16.mxu1 %v3068_v48  ;;  %v3141_v46 = vld [vmem:[%s4107_s3 + $0x38] sm:$0xff]   ;;  %v287_v48 = vlaneseq }
  0xe1   :  { %v3142_v47 = vld [vmem:[%s4107_s3 + $0xb8] sm:$0xff]  }
  0xe3   :  { %1773 = vmatpush1.bf16.msra.mxu0 %v3063_v49  ;;  %1945 = vmatpush1.bf16.msra.mxu1 %v3066_v50  ;;  %v288_v49 = vshrl.u32 %v287_v48, 7 }
  0xe4   :  { %1774 = vmatprep.subr.bf16.mxu0 %v3071_v51  ;;  %1946 = vmatprep.subr.bf16.mxu1 %v3074_v52  ;;  %v285_v52 = vld [vmem:[%s4108_s2] sm:$0xf] }
  0xe5   :  { %v289_v50 = vsub.s32 0, %v288_v49  ;;  %v297_v51 = vsub.s32 2, %v288_v49 }
  0xe7   :  { %1775 = vmatpush1.bf16.msra.mxu0 %v3069_v53  ;;  %1947 = vmatpush1.bf16.msra.mxu1 %v3072_v54  ;;  %v293_v53 = vsub.s32 1, %v288_v49  ;;  %v301_v54 = vsub.s32 3, %v288_v49 }
  0xe8   :  { %1776 = vmatprep.subr.bf16.mxu0 %v3077_v55  ;;  %1948 = vmatprep.subr.bf16.mxu1 %v3080_v56  ;;  %v290_v55 = vrot.slane %v285_v52, %v289_v50  ;;  %v298_v56 = vrot.slane %v285_v52, %v297_v51 }
  0xeb   :  { %1777 = vmatpush1.bf16.msra.mxu0 %v3075_v57  ;;  %1949 = vmatpush1.bf16.msra.mxu1 %v3078_v58  ;;  %v294_v57 = vrot.slane %v285_v52, %v293_v53  ;;  %v302_v58 = vrot.slane %v285_v52, %v301_v54 }
  0xec   :  { %1778 = vmatprep.subr.bf16.mxu0 %v3083_v59  ;;  %1950 = vmatprep.subr.bf16.mxu1 %v3086_v60 }
  0xef   :  { %1779 = vmatpush1.bf16.msra.mxu0 %v3081_v61  ;;  %1951 = vmatpush1.bf16.msra.mxu1 %v3084_v62 }
  0xf0   :  { %1780 = vmatprep.subr.bf16.mxu0 %v3089_v63  ;;  %1952 = vmatprep.subr.bf16.mxu1 %v3092_v0 }
  0xf3   :  { %1781 = vmatpush1.bf16.msra.mxu0 %v3087_v1  ;;  %1953 = vmatpush1.bf16.msra.mxu1 %v3090_v2 }
  0xf4   :  { %1782 = vmatprep.subr.bf16.mxu0 %v3095_v3  ;;  %1954 = vmatprep.subr.bf16.mxu1 %v3098_v4 }
  0xf7   :  { %1783 = vmatpush1.bf16.msra.mxu0 %v3093_v5  ;;  %1955 = vmatpush1.bf16.msra.mxu1 %v3096_v6 }
  0xf8   :  { %1784 = vmatprep.subr.bf16.mxu0 %v3101_v7  ;;  %1956 = vmatprep.subr.bf16.mxu1 %v3104_v8 }
  0xfb   :  { %1785 = vmatpush1.bf16.msra.mxu0 %v3099_v9  ;;  %1957 = vmatpush1.bf16.msra.mxu1 %v3102_v10 }
  0xfc   :  { %1786 = vmatprep.subr.bf16.mxu0 %v3107_v11  ;;  %1958 = vmatprep.subr.bf16.mxu1 %v3110_v12 }
  0xff   :  { %1787 = vmatpush1.bf16.msra.mxu0 %v3105_v13  ;;  %1959 = vmatpush1.bf16.msra.mxu1 %v3108_v16 }
 0x100   :  { %2651 = vmatprep.subr.bf16.mxu0 %v3111_v18  ;;  %2673 = vmatprep.subr.bf16.mxu1 %v3112_v20 }
 0x102   :  { %1789 = vmatmul.mubr.bf16.vlgmr.msra.gmra.mrb[0].mxu0 %v2360_v21  ;;  %1961 = vmatmul.mubr.bf16.vlgmr.msra.gmra.mrb[0].mxu1 %v2360_v21 }
 0x103   :  { %2652 = vmatpush3.bf16.msra.mxu0 %v3113_v14  ;;  %2674 = vmatpush3.bf16.msra.mxu1 %v3114_v15 }
 0x104   :  { %2653 = vmatprep.subr.bf16.mxu0 %v3115_v22  ;;  %2675 = vmatprep.subr.bf16.mxu1 %v3116_v17 }
 0x107   :  { %2654 = vmatpush3.bf16.msra.mxu0 %v3117_v19  ;;  %2676 = vmatpush3.bf16.msra.mxu1 %v3118_v23 }
 0x108   :  { %2655 = vmatprep.subr.bf16.mxu0 %v3119_v24  ;;  %2677 = vmatprep.subr.bf16.mxu1 %v3120_v25  ;;  %v2618_v25 = vld [vmem:[%s4109_s4] ss:$0 sm:$0xff] }
 0x10b   :  { %2656 = vmatpush3.bf16.msra.mxu0 %v3121_v26  ;;  %2678 = vmatpush3.bf16.msra.mxu1 %v3122_v27 }
 0x10c   :  { %2657 = vmatprep.subr.bf16.mxu0 %v3123_v28  ;;  %2679 = vmatprep.subr.bf16.mxu1 %v3124_v29 }
 0x10f   :  { %2658 = vmatpush3.bf16.msra.mxu0 %v3125_v30  ;;  %2680 = vmatpush3.bf16.msra.mxu1 %v3126_v31 }
 0x110   :  { %2659 = vmatprep.subr.bf16.mxu0 %v3127_v32  ;;  %2681 = vmatprep.subr.bf16.mxu1 %v3128_v33 }
 0x113   :  { %2660 = vmatpush3.bf16.msra.mxu0 %v3129_v34  ;;  %2682 = vmatpush3.bf16.msra.mxu1 %v3130_v35 }
 0x114   :  { %2661 = vmatprep.subr.bf16.mxu0 %v3131_v36  ;;  %2683 = vmatprep.subr.bf16.mxu1 %v3132_v37 }
 0x117   :  { %2662 = vmatpush3.bf16.msra.mxu0 %v3133_v38  ;;  %2684 = vmatpush3.bf16.msra.mxu1 %v3134_v39 }
 0x118   :  { %2663 = vmatprep.subr.bf16.mxu0 %v3135_v40  ;;  %2685 = vmatprep.subr.bf16.mxu1 %v3136_v41 }
 0x11b   :  { %2664 = vmatpush3.bf16.msra.mxu0 %v3137_v42  ;;  %2686 = vmatpush3.bf16.msra.mxu1 %v3138_v43 }
 0x11c   :  { %2665 = vmatprep.subr.bf16.mxu0 %v3139_v44  ;;  %2687 = vmatprep.subr.bf16.mxu1 %v3140_v45 }
 0x11f   :  { %2666 = vmatpush3.bf16.msra.mxu0 %v3141_v46  ;;  %2688 = vmatpush3.bf16.msra.mxu1 %v3142_v47 }
 0x1d5   :  { %v1790_v59 = vpop.f32.mrb[0].mxu0  ;;  %v1962_v60 = vpop.f32.mrb[0].mxu1 }
 0x1d6   :  { %v2695_v61 = vadd.f32 %v1790_v59, %v290_v55  ;;  %v2699_v62 = vadd.f32 %v1962_v60, %v298_v56  ;;  %v1792_v63 = vpop.f32.mrb[1].mxu0  ;;  %v1964_v0 = vpop.f32.mrb[1].mxu1 }
 0x1d7   :  { %v2696_v1 = vadd.f32 %v1792_v63, %v294_v57  ;;  %v2700_v2 = vadd.f32 %v1964_v0, %v302_v58  ;;  %v1794_v3 = vpop.f32.mrb[2].mxu0  ;;  %v1966_v4 = vpop.f32.mrb[2].mxu1 }
 0x1d8   :  { %v2697_v5 = vadd.f32 %v1794_v3, %v290_v55  ;;  %v2701_v6 = vadd.f32 %v1966_v4, %v298_v56  ;;  %v1796_v7 = vpop.f32.mrb[3].mxu0  ;;  %v1968_v8 = vpop.f32.mrb[3].mxu1  ;;  %v1971_v11 = vmax.f32 %v2695_v61, 0.0  ;;  %v1973_v12 = vmax.f32 %v2699_v62, 0.0 }
 0x1d9   :  { %v2698_v9 = vadd.f32 %v1796_v7, %v294_v57  ;;  %v2702_v10 = vadd.f32 %v1968_v8, %v302_v58  ;;  %v1972_v18 = vmax.f32 %v2696_v1, 0.0  ;;  %v1974_v20 = vmax.f32 %v2700_v2, 0.0 }
 0x1da   :  { %v1975_v13 = vmax.f32 %v2697_v5, 0.0  ;;  %v1977_v16 = vmax.f32 %v2701_v6, 0.0 }
 0x1db   :  { %v1976_v21 = vmax.f32 %v2698_v9, 0.0  ;;  %v1978_v14 = vmax.f32 %v2702_v10, 0.0 }
 0x1dc   :  { %v1979_v15 = vpack.c.bf16 %v1975_v13, %v1971_v11  ;;  %v1981_v22 = vpack.c.bf16 %v1977_v16, %v1973_v12 }
 0x1dd   :  { %v1980_v17 = vpack.c.bf16 %v1976_v21, %v1972_v18  ;;  %v1982_v19 = vpack.c.bf16 %v1978_v14, %v1974_v20 }
 0x1df   :  { %2278 = vmatprep.mubr.bf16.mxu0 %v1980_v17  ;;  %2319 = vmatprep.mubr.bf16.mxu1 %v1982_v19 }
 0x1e0   :  { %2279 = vmatmul.mubr.bf16.vlgmr.msra.gmra.mrb[4].mxu0 %v1979_v15  ;;  %2320 = vmatmul.mubr.bf16.vlgmr.msra.gmra.mrb[4].mxu1 %v1981_v22 }
 0x2b3   :  { %v2667_v23 = vpop.f32.mrb[4].mxu0  ;;  %v2689_v24 = vpop.f32.mrb[4].mxu1 }
 0x2b4   :  { %v2668_v26 = vpop.f32.mrb[5].mxu0  ;;  %v2690_v27 = vpop.f32.mrb[5].mxu1 }
 0x2b5   :  { %v2669_v28 = vadd.f32 %v2668_v26, %v2667_v23  ;;  %v2691_v29 = vadd.f32 %v2690_v27, %v2689_v24  ;;  %v2670_v30 = vpop.f32.mrb[6].mxu0  ;;  %v2692_v31 = vpop.f32.mrb[6].mxu1 }
 0x2b6   :  { %v2671_v32 = vpop.f32.mrb[7].mxu0  ;;  %v2693_v33 = vpop.f32.mrb[7].mxu1 }
 0x2b7   :  { %v2281_v34 = vadd.f32 %v2669_v28, %v2618_v25  ;;  %v2672_v35 = vadd.f32 %v2671_v32, %v2670_v30  ;;  %v2694_v36 = vadd.f32 %v2693_v33, %v2692_v31 }
 0x2b9   :  { %v2284_v37 = vadd.f32 %v2672_v35, %v2618_v25  ;;  %v2322_v38 = vadd.f32 %v2691_v29, %v2281_v34 }
 0x2bb   :  { %2328 = vmax.xlane.f32.xlu0 %v2322_v38  ;;  %v2325_v39 = vadd.f32 %v2694_v36, %v2284_v37 }
 0x2bf   :  { %2330 = vmax.xlane.f32.xlu0 %v2325_v39 }
 0x348   :  { %v2329_v40 = vpop.xlane.xlu0 %2328 }
 0x349   :  { %v2332_v41 = vsub.f32 %v2322_v38, %v2329_v40 }
 0x34b   :  { %v2334_v42 = vmul.f32 1.442695, %v2332_v41 }
 0x34c   :  { %v2331_v43 = vpop.xlane.xlu0 %2330 }
 0x34d   :  { %3143 = vpow2.f32 %v2334_v42  ;;  %v2333_v44 = vsub.f32 %v2325_v39, %v2331_v43 }
 0x34f   :  { %v2336_v45 = vmul.f32 1.442695, %v2333_v44 }
 0x351   :  { %3145 = vpow2.f32 %v2336_v45 }
 0x357   :  { %v3144_v46 = vpop.eup %3143 }
 0x358   :  { %2338 = vadd.xlane.f32.xlu1 %v3144_v46 }
 0x35b   :  { %v3146_v47 = vpop.eup %3145 }
 0x35c   :  { %2340 = vadd.xlane.f32.xlu1 %v3146_v47 }
 0x3e5   :  { %v2339_v48 = vpop.xlane.xlu1 %2338 }
 0x3e6   :  { %3147 = vrcp.f32 %v2339_v48 }
 0x3e9   :  { %v2341_v49 = vpop.xlane.xlu1 %2340 }
 0x3ea   :  { %3149 = vrcp.f32 %v2341_v49 }
 0x3f0   :  { %v3148_v50 = vpop.eup %3147 }
 0x3f1   :  { %v2346_v51 = vmul.f32 %v3148_v50, %v3144_v46 }
 0x3f3   :  { %2348 = vst [vmem:[%s4110_s5] sm:$0xff] %v2346_v51 }
 0x3f4   :  { %v3150_v52 = vpop.eup %3149 }
 0x3f5   :  { %v2347_v53 = vmul.f32 %v3150_v52, %v3146_v47 }
 0x3f7   :  { %2349 = vst [vmem:[%s4110_s5 + $0x8] sm:$0xff] %v2347_v53 }

</bundles_post_ra>
